<compile_context>
chip_gen: v5e
topology: v5e:2x2
jax: 0.10.0
libtpu: 0.0.40
codegen_flags: <defaults>
</compile_context>

<pallas_src>
import functools

import jax
import jax.numpy as jnp
from jax.experimental import pallas as pl
from jax.experimental.pallas import tpu as pltpu


def _round_up(v, m):
    return (v + m - 1) // m * m


def _tensorcores_per_chip():
    """2 on v7x (megacore split via 'parallel'), else 1."""
    try:
        kind = jax.devices()[0].device_kind.lower()
    except Exception:
        return 1
    return 2 if ("v7" in kind or "7x" in kind) else 1


_NUM_TC = _tensorcores_per_chip()


def qnetwork_kernel(xT_ref, w1T_ref, b1T_ref, w2T_ref, b2T_ref, oT_ref):
    # Layer 1: [H, S] @ [S, Bt] -> [H, Bt]  (MXU; tiny K is padded internally)
    hT = (
        jnp.dot(w1T_ref[...], xT_ref[...], preferred_element_type=jnp.float32)
        + b1T_ref[...]                                   # [H, 1] broadcasts over lanes
    )
    hT = jnp.maximum(hT, 0.0)                            # .clamp(min=0)
    # Layer 2: [Ap, H] @ [H, Bt] -> [Ap, Bt]; lane-dense unmasked store.
    oT_ref[...] = (
        jnp.dot(w2T_ref[...], hT, preferred_element_type=jnp.float32)
        + b2T_ref[...]
    )


def prepare_params(w1, b1, w2, b2):
    """One-time: transpose + pad parameters for the kernel (hoisted off hot path).

    w1: [S, H], b1: [1, H] (or [H]), w2: [H, A], b2: [1, A] (or [A]).
    Returns w1T [H,S], b1T [H,1], w2T [Ap,H], b2T [Ap,1] with Ap = round_up(A, 8).
    """
    A = w2.shape[1]
    Ap = _round_up(A, 8)
    w1T = jnp.asarray(w1).T
    b1T = jnp.asarray(b1).reshape(-1, 1)
    w2T = jnp.pad(jnp.asarray(w2).T, ((0, Ap - A), (0, 0)))
    b2T = jnp.pad(jnp.asarray(b2).reshape(-1, 1), ((0, Ap - A), (0, 0)))
    return w1T, b1T, w2T, b2T


@functools.partial(jax.jit, static_argnames=("num_tiles",))
def qnetwork_forward_t(xT, w1T, b1T, w2T, b2T, *, num_tiles=1):
    """Core forward on the transposed problem.

    xT: [S, B] f32.  Returns padded yT: [Ap, Bp] f32 (Ap = 8, Bp >= B).
    Consumers should index rows [:A] and columns [:B] directly.
    """
    S, B = xT.shape
    Ap = w2T.shape[0]

    if num_tiles > 1:
        # Multi-step grid: lane (last) block dim must be a multiple of 128.
        Bt = _round_up(-(-B // num_tiles), 128)
    else:
        # Single step: block == full array, only need f32 sublane-friendly pad.
        Bt = _round_up(B, 8)
    Bp = Bt * num_tiles

    xT_p = xT if Bp == B else jnp.pad(xT, ((0, 0), (0, Bp - B)))

    # Constant index_map -> weight/bias blocks never change -> stay VMEM-resident.
    resident = lambda shape: pl.BlockSpec(shape, lambda i: (0,) * len(shape))

    return pl.pallas_call(
        qnetwork_kernel,
        out_shape=jax.ShapeDtypeStruct((Ap, Bp), jnp.float32),
        grid=(num_tiles,),
        in_specs=[
            pl.BlockSpec((S, Bt), lambda i: (0, i)),     # batch-tiled activations
            resident(w1T.shape),
            resident(b1T.shape),
            resident(w2T.shape),
            resident(b2T.shape),
        ],
        out_specs=pl.BlockSpec((Ap, Bt), lambda i: (0, i)),
        compiler_params=pltpu.CompilerParams(
            dimension_semantics=("parallel",),           # 2-way megacore split on v7x
        ),
    )(xT_p, w1T, b1T, w2T, b2T)


def qnetwork_forward(x, w1T, b1T, w2T, b2T, action_dim):
    """Convenience wrapper matching the PyTorch module: x [B, S] -> y [B, A].

    For the DQN hot path, prefer storing replay states as [S, B] and consuming the
    padded [Ap, Bp] output of qnetwork_forward_t directly (no transpose / slice).
    """
    B = x.shape[0]
    num_tiles = _NUM_TC if (_NUM_TC > 1 and B >= 256) else 1
    yT = qnetwork_forward_t(x.T, w1T, b1T, w2T, b2T, num_tiles=num_tiles)
    return yT[:action_dim, :B].T


def init_params(key, state_dim, hidden, action_dim):
    """PyTorch-Linear-style init: U(-1/sqrt(fan_in), +1/sqrt(fan_in))."""
    k1, k2, k3, k4 = jax.random.split(key, 4)
    bound1 = 1.0 / jnp.sqrt(state_dim)
    bound2 = 1.0 / jnp.sqrt(hidden)
    w1 = jax.random.uniform(k1, (state_dim, hidden), jnp.float32, -bound1, bound1)
    b1 = jax.random.uniform(k2, (1, hidden), jnp.float32, -bound1, bound1)
    w2 = jax.random.uniform(k3, (hidden, action_dim), jnp.float32, -bound2, bound2)
    b2 = jax.random.uniform(k4, (1, action_dim), jnp.float32, -bound2, bound2)
    return w1, b1, w2, b2


def _reference(x, w1, b1, w2, b2):
    return jnp.maximum(x @ w1 + b1, 0.0) @ w2 + b2


if __name__ == "__main__":
    # Classic-control env shapes (e.g. CartPole): state_dim=4, action_dim=2, H=20.
    S, H, A = 4, 20, 2
    key = jax.random.PRNGKey(0)
    kx_small, kx_big, kp = jax.random.split(key, 3)
    w1, b1, w2, b2 = init_params(kp, S, H, A)
    w1T, b1T, w2T, b2T = prepare_params(w1, b1, w2, b2)   # one-time, off hot path

    # 1) Tiny batch (B=2): single grid step, block == full padded array.
    x_small = jax.random.normal(kx_small, (2, S), dtype=jnp.float32)
    y_small = qnetwork_forward(x_small, w1T, b1T, w2T, b2T, A)
    jax.block_until_ready(y_small)
    assert y_small.shape == (2, A)
    assert jnp.allclose(y_small, _reference(x_small, w1, b1, w2, b2),
                        atol=1e-5, rtol=1e-5)

    # 2) Replay-buffer-sized batch (B=512): 1 grid step on v5e/v6e, 2 on v7x
    #    (one Bt=256 lane-dense tile per TensorCore), output [8, 512] not [512, 128].
    x_big = jax.random.normal(kx_big, (512, S), dtype=jnp.float32)
    y_big = qnetwork_forward(x_big, w1T, b1T, w2T, b2T, A)
    jax.block_until_ready(y_big)
    assert y_big.shape == (512, A)
    assert jnp.allclose(y_big, _reference(x_big, w1, b1, w2, b2),
                        atol=1e-5, rtol=1e-5)

    # Also exercise the padded-output fast path directly (what a fused consumer uses).
    yT_big = qnetwork_forward_t(x_big.T, w1T, b1T, w2T, b2T,
                                num_tiles=_NUM_TC if _NUM_TC > 1 else 1)
    jax.block_until_ready(yT_big)
    assert jnp.allclose(yT_big[:A, :512].T, _reference(x_big, w1, b1, w2, b2),
                        atol=1e-5, rtol=1e-5)

    # TODO(synk): the DQN training machinery (Adam step, my_loss / MSE on gathered
    # Q(s,a), replay buffer) stays outside this forward kernel; next step is fusing
    # the action gather / max over the first A rows (with padded rows masked to -inf)
    # into this pallas_call so one launch replaces forward + slice + gather/max.
    print("KERNEL_OK")
</pallas_src>

<mosaic_0001>
module attributes {stable_mosaic.version = 11 : i64} {
  func.func @qnetwork_kernel(%arg0: i32, %arg1: memref<4x8xf32, #tpu.memory_space<vmem>>, %arg2: memref<20x4xf32, #tpu.memory_space<vmem>>, %arg3: memref<20x1xf32, #tpu.memory_space<vmem>>, %arg4: memref<8x20xf32, #tpu.memory_space<vmem>>, %arg5: memref<8x1xf32, #tpu.memory_space<vmem>>, %arg6: memref<8x8xf32, #tpu.memory_space<vmem>>) attributes {dimension_semantics = [#tpu.dimension_semantics<parallel>], iteration_bounds = array<i64: 1>, scalar_prefetch = 0 : i64, scratch_operands = 0 : i64, tpu.core_type = #tpu.core_type<tc>, window_params = [{transform_indices = @transform_0, window_bounds = array<i64: 4, 8>}, {pipeline_mode = #tpu.pipeline_mode<synchronous>, transform_indices = @transform_1, window_bounds = array<i64: 20, 4>}, {pipeline_mode = #tpu.pipeline_mode<synchronous>, transform_indices = @transform_2, window_bounds = array<i64: 20, 1>}, {pipeline_mode = #tpu.pipeline_mode<synchronous>, transform_indices = @transform_3, window_bounds = array<i64: 8, 20>}, {pipeline_mode = #tpu.pipeline_mode<synchronous>, transform_indices = @transform_4, window_bounds = array<i64: 8, 1>}, {transform_indices = @transform_5, window_bounds = array<i64: 8, 8>}]} {
    %c0 = arith.constant 0 : index
    %c0_0 = arith.constant 0 : index
    %0 = vector.load %arg2[%c0, %c0_0] : memref<20x4xf32, #tpu.memory_space<vmem>>, vector<20x4xf32>
    %c0_1 = arith.constant 0 : index
    %c0_2 = arith.constant 0 : index
    %1 = vector.load %arg1[%c0_1, %c0_2] : memref<4x8xf32, #tpu.memory_space<vmem>>, vector<4x8xf32>
    %cst = arith.constant dense<0.000000e+00> : vector<20x8xf32>
    %2 = tpu.matmul %0, %1, %cst {dimension_numbers = #tpu.dot_dimension_numbers<[1], [0], [0], [1], [0, 0, 1, 1], [], []>} : vector<20x4xf32>, vector<4x8xf32>, vector<20x8xf32> -> vector<20x8xf32>
    %c0_3 = arith.constant 0 : index
    %c0_4 = arith.constant 0 : index
    %3 = vector.load %arg3[%c0_3, %c0_4] : memref<20x1xf32, #tpu.memory_space<vmem>>, vector<20x1xf32>
    %4 = vector.broadcast %3 : vector<20x1xf32> to vector<20x8xf32>
    %5 = arith.addf %2, %4 : vector<20x8xf32>
    %cst_5 = arith.constant 0.000000e+00 : f32
    %6 = vector.broadcast %cst_5 : f32 to vector<20x8xf32>
    %7 = arith.maximumf %5, %6 : vector<20x8xf32>
    %c0_6 = arith.constant 0 : index
    %c0_7 = arith.constant 0 : index
    %8 = vector.load %arg4[%c0_6, %c0_7] : memref<8x20xf32, #tpu.memory_space<vmem>>, vector<8x20xf32>
    %cst_8 = arith.constant dense<0.000000e+00> : vector<8x8xf32>
    %9 = tpu.matmul %8, %7, %cst_8 {dimension_numbers = #tpu.dot_dimension_numbers<[1], [0], [0], [1], [0, 0, 1, 1], [], []>} : vector<8x20xf32>, vector<20x8xf32>, vector<8x8xf32> -> vector<8x8xf32>
    %c0_9 = arith.constant 0 : index
    %c0_10 = arith.constant 0 : index
    %10 = vector.load %arg5[%c0_9, %c0_10] : memref<8x1xf32, #tpu.memory_space<vmem>>, vector<8x1xf32>
    %11 = vector.broadcast %10 : vector<8x1xf32> to vector<8x8xf32>
    %12 = arith.addf %9, %11 : vector<8x8xf32>
    %c0_11 = arith.constant 0 : index
    %c0_12 = arith.constant 0 : index
    %13 = vector.load %arg6[%c0_11, %c0_12] : memref<8x8xf32, #tpu.memory_space<vmem>>, vector<8x8xf32>
    tpu.vector_store %arg6[%c0_11, %c0_12], %12 {strides = array<i32>} : memref<8x8xf32, #tpu.memory_space<vmem>>, vector<8x8xf32>,
    return
  }
  func.func @transform_0(%arg0: i32) -> (i32, i32) {
    %c0_i32 = arith.constant 0 : i32
    %c0_i32_0 = arith.constant 0 : i32
    return %c0_i32, %arg0 : i32, i32
  }
  func.func @transform_1(%arg0: i32) -> (i32, i32) {
    %c0_i32 = arith.constant 0 : i32
    %c0_i32_0 = arith.constant 0 : i32
    %c0_i32_1 = arith.constant 0 : i32
    return %c0_i32, %c0_i32_0 : i32, i32
  }
  func.func @transform_2(%arg0: i32) -> (i32, i32) {
    %c0_i32 = arith.constant 0 : i32
    %c0_i32_0 = arith.constant 0 : i32
    %c0_i32_1 = arith.constant 0 : i32
    return %c0_i32, %c0_i32_0 : i32, i32
  }
  func.func @transform_3(%arg0: i32) -> (i32, i32) {
    %c0_i32 = arith.constant 0 : i32
    %c0_i32_0 = arith.constant 0 : i32
    %c0_i32_1 = arith.constant 0 : i32
    return %c0_i32, %c0_i32_0 : i32, i32
  }
  func.func @transform_4(%arg0: i32) -> (i32, i32) {
    %c0_i32 = arith.constant 0 : i32
    %c0_i32_0 = arith.constant 0 : i32
    %c0_i32_1 = arith.constant 0 : i32
    return %c0_i32, %c0_i32_0 : i32, i32
  }
  func.func @transform_5(%arg0: i32) -> (i32, i32) {
    %c0_i32 = arith.constant 0 : i32
    %c0_i32_0 = arith.constant 0 : i32
    return %c0_i32, %arg0 : i32, i32
  }
}

</mosaic_0001>

<bundles_post_ra>
// kernel: qnetwork_forward_t.1
= control target key start
LH: loop header
LB: loop body
LE: loop exit
PB: predicated region body
PF: predicated region fallthrough
CT: control target
= control target key end

     0   :  { %vm53_vm0 = vcmask 1043456   ;;  %vm43_vm1 = vcmask 31744   ;;  %v176_v5 = vmov 0   ;;  %s242_s0 = inlined_call_operand.vmem [shape: f32[4,8], index: 0, kind: input, shape index: {}]   ;;  %s243_s1 = inlined_call_operand.vmem [shape: f32[20,4], index: 1, kind: input, shape index: {}]   ;;  %s244_s2 = inlined_call_operand.vmem [shape: f32[20,1], index: 2, kind: input, shape index: {}]   ;;  %s245_s3 = inlined_call_operand.vmem [shape: f32[8,20], index: 3, kind: input, shape index: {}]   ;;  %s246_s4 = inlined_call_operand.vmem [shape: f32[8,1], index: 4, kind: input, shape index: {}]   ;;  %s247_s5 = inlined_call_operand.hbm [shape: f32[8,8], index: 5, kind: output, shape index: {}]  }
   0x1   :  { %v24_v0 = vld [vmem:[%s242_s0] sm:$0xf]  ;;  %v22_v1 = vld [vmem:[%s243_s1 + $0x8] sm:$0xff]  ;;  %v23_v2 = vld [vmem:[%s243_s1 + $0x10] sm:$0xf]  ;;  %148 = vset.pattern.permute.xlu0 %v176_v5 }
   0x2   :  { %144 = vmatpush.msk.msra.mxu2 %vm53_vm0, %v24_v0  ;;  %145 = vmatpush.msk.msra.mxu3 %vm53_vm0, %v24_v0  ;;  %v27_v3 = vld [vmem:[%s244_s2 + $0x10] sm:$0xf]  ;;  %v21_v4 = vld [vmem:[%s243_s1] sm:$0xff] }
   0x3   :  { %140 = vmatmul.msk.f32.vlgmr.msra.gmra.mxu2 %vm43_vm1, %v22_v1  ;;  %141 = vmatmul.msk.f32.vlgmr.msra.gmra.mxu3 %vm43_vm1, %v23_v2  ;;  %v25_v6 = vld [vmem:[%s244_s2] sm:$0xff] }
   0x4   :  { %138 = vmatpush.msk.msra.mxu0 %vm53_vm0, %v24_v0 }
   0x5   :  { %10 = vsyncpa [#allocation3], 0  ;;  %40 = vperm.xlu0 %148, %v27_v3   ;;  %139 = vmatmul.msk.f32.vlgmr.msra.gmra.mxu0 %vm43_vm1, %v21_v4  ;;  %v26_v7 = vld [vmem:[%s244_s2 + $0x8] sm:$0xff]  ;;  %v87_v8 = vld [vmem:[%s246_s4] sm:$0xff]  ;;  %vm93_vm2 = vcmask 162816   ;;  %s177_s4 = smov [#allocation2]  }
   0x6   :  { %149 = vset.pattern.permute.xlu1 %v176_v5  ;;  %v86_v21 = vld [vmem:[%s245_s3] sm:$0xff]  ;;  %s127_s8 = sshll.u32 %s177_s4, 4  ;;  %s129_s11 = sshll.u32 %s247_s5, 4  ;;  %vm120_vm3 = vcmask 64512   ;;  %s128_s8 = int_to_ptr.vmem [resolvable:$true] %s127_s8  ;;  %s130_s11 = int_to_ptr.hbm [resolvable:$true] %s129_s11 }
   0x7   :  { %30 = vperm.xlu1 %149, %v25_v6  }
   0xd   :  { %35 = vperm.xlu0 %148, %v26_v7  }
   0xf   :  { %90 = vperm.xlu1 %149, %v87_v8  }
  0x77   :  { %v41_v9 = vpop.permute.xlu0 %40 }
  0x79   :  { %v31_v12 = vpop.permute.xlu1 %30 }
  0x7f   :  { %v36_v11 = vpop.permute.xlu0 %35 }
  0x81   :  { %v91_v22 = vpop.permute.xlu1 %90 }
  0x82   :  { %v74_v10 = vpop.f32.mrf.mxu0 }
  0x83   :  { %v75_v17 = vadd.f32 %v74_v10, %v31_v12 }
  0x85   :  { %v83_v20 = vmax.f32 %v75_v17, 0.0 }
  0x86   :  { %v77_v13 = vpop.f32.mrf.mxu2  ;;  %v80_v14 = vpop.f32.mrf.mxu3 }
  0x87   :  { %v78_v15 = vadd.f32 %v77_v13, %v36_v11  ;;  %v81_v16 = vadd.f32 %v80_v14, %v41_v9 }
  0x89   :  { %v85_v18 = vmax.f32 %v81_v16, 0.0  ;;  %v84_v19 = vmax.f32 %v78_v15, 0.0 }
  0x8b   :  { %142 = vmatpush.msk.msra.mxu1 %vm53_vm0, %v85_v18 }
  0x8d   :  { %114 = vmatpush.msra.mxu1 %v84_v19 }
  0x8f   :  { %115 = vmatpush.msra.mxu1 %v83_v20 }
  0x90   :  { %143 = vmatmul.msk.f32.vlgmr.msra.gmra.mxu1 %vm93_vm2, %v86_v21 }
 0x10d   :  { %v117_v23 = vpop.f32.mrf.mxu1 }
 0x10e   :  { %v118_v24 = vadd.f32 %v117_v23, %v91_v22 }
 0x110   :  { %121 = vst.msk [vmem:[#allocation2] sm:$0xff] %vm120_vm3, %v118_v24 }
 0x111   :  { %132 = dma.vmem_to_hbm [thread:$0]  %s128_s8, 128, %s130_s11, [#allocation3]  }
 0x112   :  { %174 = dma.done.wait [#allocation3], 128  }
 0x113   :  { %175 = vsyncadd [#allocation3], 4294967168 }
 0x114   :  { %137 = vsyncpa [#allocation3], 1 }

</bundles_post_ra>
